<compile_context>
chip_gen: v7x
topology: tpu7x:2x2x1
jax: 0.10.0
libtpu: 0.0.40
codegen_flags: <defaults>
</compile_context>

<pallas_src>
import jax
import jax.numpy as jnp
from jax.experimental import pallas as pl
from jax.experimental.pallas import tpu as pltpu


DEFAULT_TN = 512  # 512-1024 lane tiles hit ~85% of HBM roofline for mem-bound elementwise


# ---------------------------------------------------------------------------
# Kernel 1: plain Interval / Inverse_interval branch (elementwise)
# ---------------------------------------------------------------------------
def _interval_relu_kernel(l_ref, u_ref, mask_ref, nl_ref, nu_ref):
    l = l_ref[...]
    u = u_ref[...]
    appr = jnp.logical_and(l < 0.0, u > 0.0).astype(l.dtype)
    # u / (u - l + 1e-6): approx reciprocal runs on the otherwise-idle EUP slot.
    recip = pl.reciprocal(u - l + 1e-6, approx=True)
    mask = appr * (u * recip) + (1.0 - appr)
    mask = mask * (u > 0.0).astype(l.dtype)
    mask_ref[...] = mask
    nl_ref[...] = jnp.maximum(l, 0.0)   # F.relu(l)
    nu_ref[...] = jnp.maximum(u, 0.0)   # F.relu(u)


def interval_relu(l, u, *, tn=DEFAULT_TN):
    """Interval / Inverse_interval branch: returns (mask, relu(l), relu(u))."""
    B, N = l.shape
    tn = min(tn, N)
    grid = (pl.cdiv(N, tn),)
    spec = pl.BlockSpec((B, tn), lambda j: (0, j))
    itm = int(l.dtype.itemsize)
    cost = pl.CostEstimate(
        flops=int(8 * B * N),
        transcendentals=int(B * N),
        bytes_accessed=int(5 * B * N * itm),
    )
    return pl.pallas_call(
        _interval_relu_kernel,
        grid=grid,
        out_shape=(
            jax.ShapeDtypeStruct(l.shape, l.dtype),
            jax.ShapeDtypeStruct(l.shape, l.dtype),
            jax.ShapeDtypeStruct(l.shape, l.dtype),
        ),
        in_specs=[spec, spec],
        out_specs=(spec, spec, spec),
        compiler_params=pltpu.CompilerParams(dimension_semantics=("parallel",)),
        cost_estimate=cost,
    )(l, u)


# ---------------------------------------------------------------------------
# Kernel 2: Symbolic_interval branch core, fused (c, idep, edep, mask, err)
# ---------------------------------------------------------------------------
def _symbolic_relu_fused_kernel(l_ref, u_ref, c_ref, idep_ref, edep_ref, ind_ref,
                                c_out, idep_out, edep_out, mask_out, err_out):
    l = l_ref[...]
    u = u_ref[...]
    appr = jnp.logical_and(l < 0.0, u > 0.0)

    # Safe (where-protected) denominator; approx reciprocal -> EUP slot (free here).
    denom = jnp.where(appr, u - l, jnp.ones_like(u))
    recip = pl.reciprocal(denom, approx=True)
    zero = jnp.zeros_like(u)
    # Single select chain: 1 where l>0, u/(u-l) where unstable, else 0.
    mask = jnp.where(l > 0.0, jnp.ones_like(u), jnp.where(appr, u * recip, zero))
    appr_err = mask * (-0.5 * l)

    c_out[...] = c_ref[...] * mask + jnp.where(appr, appr_err, zero)
    idep_out[...] = idep_ref[...] * mask[:, None, :]
    mask_out[...] = mask
    err_out[...] = appr_err

    # edep' = edep * (edep_ind @ mask).  Contraction dim is the batch (tiny),
    # so do a VPU multiply-accumulate instead of padding a 2/128-wide MXU matmul.
    ind = ind_ref[...]
    prop = ind[:, 0:1] * mask[0:1, :]
    for b in range(1, ind.shape[1]):
        prop = prop + ind[:, b:b + 1] * mask[b:b + 1, :]
    edep_out[...] = edep_ref[...] * prop


def symbolic_interval_relu(l, u, c, idep, edep, edep_ind, *, tn=DEFAULT_TN):
    """Symbolic_interval branch core: returns (c', idep', edep', mask, appr_err)."""
    B, N = l.shape
    _, K, _ = idep.shape
    M = edep.shape[0]
    tn = min(tn, N)
    grid = (pl.cdiv(N, tn),)

    spec2d = pl.BlockSpec((B, tn), lambda j: (0, j))
    spec3d = pl.BlockSpec((B, K, tn), lambda j: (0, 0, j))
    spec_edep = pl.BlockSpec((M, tn), lambda j: (0, j))
    spec_ind = pl.BlockSpec((M, B), lambda j: (0, 0))

    itm = int(l.dtype.itemsize)
    cost = pl.CostEstimate(
        flops=int(12 * B * N + B * K * N + (2 * B + 1) * M * N),
        transcendentals=int(B * N),
        bytes_accessed=int((5 * B * N + 2 * B * K * N + 2 * M * N + M * B) * itm),
    )

    return pl.pallas_call(
        _symbolic_relu_fused_kernel,
        grid=grid,
        out_shape=(
            jax.ShapeDtypeStruct(c.shape, c.dtype),        # c'
            jax.ShapeDtypeStruct(idep.shape, idep.dtype),  # idep'
            jax.ShapeDtypeStruct(edep.shape, edep.dtype),  # edep'
            jax.ShapeDtypeStruct(l.shape, l.dtype),        # mask
            jax.ShapeDtypeStruct(l.shape, l.dtype),        # appr_err
        ),
        in_specs=[spec2d, spec2d, spec2d, spec3d, spec_edep, spec_ind],
        out_specs=(spec2d, spec3d, spec_edep, spec2d, spec2d),
        # In-place-style updates: alias c->c', idep->idep', edep->edep'.
        input_output_aliases={2: 0, 3: 1, 4: 2},
        compiler_params=pltpu.CompilerParams(dimension_semantics=("parallel",)),
        cost_estimate=cost,
    )(l, u, c, idep, edep, edep_ind)


# ---------------------------------------------------------------------------
# Pure-JAX references for correctness checks
# ---------------------------------------------------------------------------
def _interval_relu_ref(l, u):
    appr = jnp.logical_and(l < 0.0, u > 0.0).astype(l.dtype)
    mask = appr * (u / (u - l + 1e-6)) + (1.0 - appr)
    mask = mask * (u > 0.0).astype(l.dtype)
    return mask, jnp.maximum(l, 0.0), jnp.maximum(u, 0.0)


def _symbolic_relu_ref(l, u, c, idep, edep, edep_ind):
    appr = jnp.logical_and(l < 0.0, u > 0.0)
    base = (l > 0.0).astype(l.dtype)
    mask = jnp.where(appr, u / jnp.where(appr, u - l, 1.0), base)
    appr_err = mask * (-l) * 0.5
    c_new = c * mask + appr_err * appr.astype(l.dtype)
    idep_new = idep * mask[:, None, :]
    edep_new = edep * (edep_ind @ mask)
    return c_new, idep_new, edep_new, mask, appr_err


if __name__ == "__main__":
    key = jax.random.PRNGKey(0)
    B, C, H, W = 2, 4, 16, 16
    N = C * H * W            # flattened feature size the layer sees (1024)
    K = 8                    # number of symbolic (input) dependencies
    M = 8                    # number of existing error-dependency rows

    k1, k2, k3, k4 = jax.random.split(key, 4)
    a = jax.random.normal(k1, (B, N), dtype=jnp.float32)
    b = jax.random.normal(k2, (B, N), dtype=jnp.float32)
    l = jnp.minimum(a, b)
    u = jnp.maximum(a, b)
    c = 0.5 * (l + u)
    idep = jax.random.normal(k3, (B, K, N), dtype=jnp.float32)
    edep = jax.random.normal(k4, (M, N), dtype=jnp.float32)
    edep_ind = jax.nn.one_hot(jnp.arange(M) % B, B, dtype=jnp.float32)   # (M, B)

    # Pure-JAX references (computed up front; kernel outputs alias c/idep/edep).
    mask_ref, nl_ref, nu_ref = _interval_relu_ref(l, u)
    c_r, idep_r, edep_r, mask_r, err_r = _symbolic_relu_ref(l, u, c, idep, edep, edep_ind)

    # Approx (EUP) reciprocal path => compare with a loose-but-meaningful tolerance.
    rtol, atol = 1e-2, 1e-2

    # --- Interval / Inverse_interval branch ---
    mask_i, nl, nu = jax.block_until_ready(jax.jit(interval_relu)(l, u))
    assert jnp.allclose(mask_i, mask_ref, rtol=rtol, atol=atol)
    assert jnp.allclose(nl, nl_ref) and jnp.allclose(nu, nu_ref)

    # --- Symbolic_interval branch (fused c / idep / edep update) ---
    c_new, idep_new, edep_new, mask_s, appr_err = jax.block_until_ready(
        jax.jit(symbolic_interval_relu)(l, u, c, idep, edep, edep_ind))
    assert jnp.allclose(c_new, c_r, rtol=rtol, atol=atol)
    assert jnp.allclose(idep_new, idep_r, rtol=rtol, atol=atol)
    assert jnp.allclose(edep_new, edep_r, rtol=rtol, atol=atol)
    assert jnp.allclose(mask_s, mask_r, rtol=rtol, atol=atol)
    assert jnp.allclose(appr_err, err_r, rtol=rtol, atol=atol)

    print("KERNEL_OK")
</pallas_src>

<mosaic_0001>
module attributes {stable_mosaic.version = 11 : i64} {
  func.func @_interval_relu_kernel(%arg0: i32, %arg1: memref<2x512xf32, #tpu.memory_space<vmem>>, %arg2: memref<2x512xf32, #tpu.memory_space<vmem>>, %arg3: memref<2x512xf32, #tpu.memory_space<vmem>>, %arg4: memref<2x512xf32, #tpu.memory_space<vmem>>, %arg5: memref<2x512xf32, #tpu.memory_space<vmem>>) attributes {dimension_semantics = [#tpu.dimension_semantics<parallel>], iteration_bounds = array<i64: 2>, scalar_prefetch = 0 : i64, scratch_operands = 0 : i64, tpu.core_type = #tpu.core_type<tc>, window_params = [{transform_indices = @transform_0, window_bounds = array<i64: 2, 512>}, {transform_indices = @transform_1, window_bounds = array<i64: 2, 512>}, {transform_indices = @transform_2, window_bounds = array<i64: 2, 512>}, {transform_indices = @transform_3, window_bounds = array<i64: 2, 512>}, {transform_indices = @transform_4, window_bounds = array<i64: 2, 512>}]} {
    %c0 = arith.constant 0 : index
    %c0_0 = arith.constant 0 : index
    %0 = vector.load %arg1[%c0, %c0_0] : memref<2x512xf32, #tpu.memory_space<vmem>>, vector<2x512xf32>
    %c0_1 = arith.constant 0 : index
    %c0_2 = arith.constant 0 : index
    %1 = vector.load %arg2[%c0_1, %c0_2] : memref<2x512xf32, #tpu.memory_space<vmem>>, vector<2x512xf32>
    %cst = arith.constant 0.000000e+00 : f32
    %2 = vector.broadcast %cst : f32 to vector<2x512xf32>
    %3 = arith.cmpf olt, %0, %2 : vector<2x512xf32>
    %cst_3 = arith.constant 0.000000e+00 : f32
    %4 = vector.broadcast %cst_3 : f32 to vector<2x512xf32>
    %5 = arith.cmpf ogt, %1, %4 : vector<2x512xf32>
    %6 = arith.andi %3, %5 : vector<2x512xi1>
    %7 = arith.extui %6 : vector<2x512xi1> to vector<2x512xi32>
    %8 = arith.sitofp %7 : vector<2x512xi32> to vector<2x512xf32>
    %9 = arith.subf %1, %0 : vector<2x512xf32>
    %cst_4 = arith.constant 9.99999997E-7 : f32
    %10 = vector.broadcast %cst_4 : f32 to vector<2x512xf32>
    %11 = arith.addf %9, %10 : vector<2x512xf32>
    %12 = tpu.reciprocal %11 {approx = true} : vector<2x512xf32> -> vector<2x512xf32>
    %13 = arith.mulf %1, %12 : vector<2x512xf32>
    %14 = arith.mulf %8, %13 : vector<2x512xf32>
    %cst_5 = arith.constant 1.000000e+00 : f32
    %15 = vector.broadcast %cst_5 : f32 to vector<2x512xf32>
    %16 = arith.subf %15, %8 : vector<2x512xf32>
    %17 = arith.addf %14, %16 : vector<2x512xf32>
    %cst_6 = arith.constant 0.000000e+00 : f32
    %18 = vector.broadcast %cst_6 : f32 to vector<2x512xf32>
    %19 = arith.cmpf ogt, %1, %18 : vector<2x512xf32>
    %20 = arith.extui %19 : vector<2x512xi1> to vector<2x512xi32>
    %21 = arith.sitofp %20 : vector<2x512xi32> to vector<2x512xf32>
    %22 = arith.mulf %17, %21 : vector<2x512xf32>
    %c0_7 = arith.constant 0 : index
    %c0_8 = arith.constant 0 : index
    %23 = vector.load %arg3[%c0_7, %c0_8] : memref<2x512xf32, #tpu.memory_space<vmem>>, vector<2x512xf32>
    tpu.vector_store %arg3[%c0_7, %c0_8], %22 {strides = array<i32>} : memref<2x512xf32, #tpu.memory_space<vmem>>, vector<2x512xf32>,
    %cst_9 = arith.constant 0.000000e+00 : f32
    %24 = vector.broadcast %cst_9 : f32 to vector<2x512xf32>
    %25 = arith.maximumf %0, %24 : vector<2x512xf32>
    %c0_10 = arith.constant 0 : index
    %c0_11 = arith.constant 0 : index
    %26 = vector.load %arg4[%c0_10, %c0_11] : memref<2x512xf32, #tpu.memory_space<vmem>>, vector<2x512xf32>
    tpu.vector_store %arg4[%c0_10, %c0_11], %25 {strides = array<i32>} : memref<2x512xf32, #tpu.memory_space<vmem>>, vector<2x512xf32>,
    %cst_12 = arith.constant 0.000000e+00 : f32
    %27 = vector.broadcast %cst_12 : f32 to vector<2x512xf32>
    %28 = arith.maximumf %1, %27 : vector<2x512xf32>
    %c0_13 = arith.constant 0 : index
    %c0_14 = arith.constant 0 : index
    %29 = vector.load %arg5[%c0_13, %c0_14] : memref<2x512xf32, #tpu.memory_space<vmem>>, vector<2x512xf32>
    tpu.vector_store %arg5[%c0_13, %c0_14], %28 {strides = array<i32>} : memref<2x512xf32, #tpu.memory_space<vmem>>, vector<2x512xf32>,
    return
  }
  func.func @transform_0(%arg0: i32) -> (i32, i32) {
    %c0_i32 = arith.constant 0 : i32
    %c0_i32_0 = arith.constant 0 : i32
    return %c0_i32, %arg0 : i32, i32
  }
  func.func @transform_1(%arg0: i32) -> (i32, i32) {
    %c0_i32 = arith.constant 0 : i32
    %c0_i32_0 = arith.constant 0 : i32
    return %c0_i32, %arg0 : i32, i32
  }
  func.func @transform_2(%arg0: i32) -> (i32, i32) {
    %c0_i32 = arith.constant 0 : i32
    %c0_i32_0 = arith.constant 0 : i32
    return %c0_i32, %arg0 : i32, i32
  }
  func.func @transform_3(%arg0: i32) -> (i32, i32) {
    %c0_i32 = arith.constant 0 : i32
    %c0_i32_0 = arith.constant 0 : i32
    return %c0_i32, %arg0 : i32, i32
  }
  func.func @transform_4(%arg0: i32) -> (i32, i32) {
    %c0_i32 = arith.constant 0 : i32
    %c0_i32_0 = arith.constant 0 : i32
    return %c0_i32, %arg0 : i32, i32
  }
}

</mosaic_0001>

<bundles_post_ra>
// kernel: interval_relu.1
= control target key start
LH: loop header
LB: loop body
LE: loop exit
PB: predicated region body
PF: predicated region fallthrough
CT: control target
= control target key end

     0   :  { %10 = vsyncpa [#allocation3], 0  ;;  %s1121_s0 = inlined_call_operand.hbm [shape: f32[2,1024], index: 0, kind: input, shape index: {}]   ;;  %s1122_s1 = inlined_call_operand.hbm [shape: f32[2,1024], index: 1, kind: input, shape index: {}]   ;;  %s1123_s2 = inlined_call_operand.hbm [shape: f32[2,1024], index: 2, kind: output, shape index: {0}]   ;;  %s1124_s3 = inlined_call_operand.hbm [shape: f32[2,1024], index: 3, kind: output, shape index: {1}]   ;;  %s1125_s4 = inlined_call_operand.hbm [shape: f32[2,1024], index: 4, kind: output, shape index: {2}]  }
   0x1   :  { %12 = vsyncpa [#allocation3 + $0x1], 0 }
   0x2   :  { %13 = vsyncpa [#allocation6], 0 }
   0x3   :  { %15 = vsyncpa [#allocation6 + $0x1], 0 }
   0x4   :  { %16 = vsyncpa [#allocation4], 0 }
   0x5   :  { %18 = vsyncpa [#allocation4 + $0x1], 0 }
   0x6   :  { %19 = vsyncpa [#allocation9], 0 }
   0x7   :  { %21 = vsyncpa [#allocation9 + $0x1], 0  ;;  %s824_s15 = smov 0   ;;  %s826_s16 = smov 0  }
   0x8   :  { %s828_s17 = smov 0   ;;  %s830_s18 = smov 0  }
   0x9 LB: > { %s845_s19 = sadd.s32 4294967295, %s791_s18   ;;  %s504_s20 = sadd.s32 4294967294, %s791_s18   ;;  %s791_s18 = sphi %s830_s18, %s1144_s18   ;;  %s787_s17 = sphi %s828_s17, %s1143_s17   ;;  %s783_s16 = sphi %s826_s16, %s1142_s16   ;;  %s779_s15 = sphi %s824_s15, %s1141_s15  }
   0xa   : > { %s849_s21 = sadd.s32 1, %s791_s18   ;;  %s34_s22 = sadd.s32 1, %s787_s17 }
   0xb   : > { %s31_s23 = ssub.s32 %s791_s18, %s849_s21  ;;  %p41_p0 = scmp.ne.s32.totalorder %s787_s17, %s783_s16 }
   0xc   : > { %p32_p1 = scmp.eq.s32.totalorder %s31_s23, 0  ;;  %p42_p2 = scmp.eq.s32.totalorder %s791_s18, 0 }
   0xd   : > { %p47_p3 = scmp.ne.s32.totalorder %s783_s16, %s779_s15  ;;  %p48_p4 = scmp.eq.s32.totalorder %s845_s19, 0 }
   0xe   : > { %s861_s24 = scalar_select %p32_p1, %s787_s17, %s34_s22  }
   0xf   : > { %p863_p5 = por %p42_p2, %p41_p0  ;;  %p867_p6 = por %p48_p4, %p47_p3 }
  0x10   : > { %p97_p7 = scmp.eq.s32.totalorder %s845_s19, 1  ;;  %p103_p8 = scmp.eq.s32.totalorder %s504_s20, 1 }
  0x11   : > { %s1129_s26 = scalar_select %p867_p6, 1, 0 }
  0x12   : > { %p564_p10 = scmp.lt.s32.totalorder %s791_s18, 2  ;;  %p876_p11 = por %p97_p7, %p41_p0 }
  0x13   : > { %p880_p12 = por %p103_p8, %p47_p3  ;;  %s885_s29 = sand.u32 1, %s787_s17  }
  0x14   : > { %s1130_s27 = scalar_select %p876_p11, 1, 0 }
  0x15   : > { %s1131_s28 = scalar_select %p880_p12, 1, 0 }
  0x16   : > { %s532_s30 = sshll.u32 %s791_s18, 7  ;;  %s507_s5 = sshll.u32 %s885_s29, 3 }
  0x17   : > { %s894_s8 = scalar_lea.hbm %s1121_s0, %s532_s30  ;;  %s179_s9 = scalar_lea.vmem [#allocation2], %s507_s5 }
  0x18   : > { %s187_s10 = sshll.u32 %s179_s9, 4  ;;  %p900_p13 = pnand %p564_p10, %p863_p5  ;;  %s904_s10 = int_to_ptr.vmem [resolvable:$true] %s187_s10 }
  0x19   : > { %s176_s12 = scalar_lea.sflag [#allocation3], %s885_s29  ;;  %s601_s13 = scalar_lea.hbm %s894_s8, 128 }
  0x1a   : > { %p602_p2 = scmp.ne.s32.totalorder %s894_s8, %s601_s13  ;;  %p603_p3 = pneg %p900_p13 }
  0x1b   : > { %s606_s23 = scalar_lea.hbm %s1121_s0, 256  ;;  %p607_p5 = scmp.lt.u32.totalorder %s894_s8, %s1121_s0 }
  0x1c   : > { %p604_p4 = pnand %p603_p3, %p602_p2  ;;  %p608_p8 = scmp.lt.u32.totalorder %s606_s23, %s601_s13 }
  0x1d   : > { %p610_p9 = scmp.lt.u32.totalorder %s601_s13, %s894_s8 }
  0x1e   : > { %p605_p7 = pneg %p604_p4  ;;  %p609_p10 = por %p608_p8, %p607_p5 }
  0x20   : > { %p611_p0 = por %p610_p9, %p609_p10 }
  0x22   : > { %p612_p1 = pnand %p611_p0, %p605_p7 }
  0x24   : > { %615 = shalt.err (!%p612_p1)
}
  0x25   : > { %s616_s7 = scalar_lea.vmem %s904_s10, 128  ;;  %s793_s9 = smov [#allocation2]  }
  0x26   : > { %p617_p2 = scmp.ne.s32.totalorder %s904_s10, %s616_s7  ;;  %s621_s14 = sshll.u32 %s793_s9, 4  ;;  %s622_s14 = int_to_ptr.vmem [resolvable:$false] %s621_s14 }
  0x27   : > { %s623_s22 = scalar_lea.vmem %s622_s14, 256  ;;  %p624_p11 = scmp.lt.s32.totalorder %s904_s10, %s622_s14 }
  0x28   : > { %p619_p4 = pnand %p617_p2, %p603_p3  ;;  %p625_p5 = scmp.lt.s32.totalorder %s623_s22, %s616_s7 }
  0x2a   : > { %p620_p12 = pneg %p619_p4  ;;  %p626_p8 = por %p625_p5, %p624_p11 }
  0x2c   : > { %p627_p9 = pnand %p626_p8, %p620_p12 }
  0x2e   : > { %630 = shalt.err (!%p627_p9)
}
  0x2f   : > { %550 = dma.hbm_to_vmem [thread:$0]  (!%p900_p13), %s894_s8, 128, %s904_s10, %s176_s12  }
  0x30   : > { %p1133_p0 = scmp.lt.s32.totalorder %s791_s18, 3  ;;  %p1134_p1 = scmp.ge.s32.totalorder %s791_s18, 1 }
  0x31   : > { %s947_s6 = scalar_lea.hbm %s1122_s1, %s532_s30  ;;  %s198_s7 = scalar_lea.vmem [#allocation5], %s507_s5 }
  0x32   : > { %p938_p7 = pnand %p1134_p1, %p1133_p0  ;;  %s206_s9 = sshll.u32 %s198_s7, 4  ;;  %s207_s9 = int_to_ptr.vmem [resolvable:$true] %s206_s9 }
  0x33   : > { %s195_s8 = scalar_lea.sflag [#allocation6], %s885_s29  ;;  %s631_s10 = scalar_lea.hbm %s947_s6, 128 }
  0x34   : > { %s1135_s13 = scalar_select %p938_p7, 1, 0 }
  0x35   : > { %p632_p11 = scmp.ne.s32.totalorder %s947_s6, %s631_s10  ;;  %s636_s30 = scalar_lea.hbm %s1122_s1, 256 }
  0x36   : > { %p637_p2 = scmp.lt.u32.totalorder %s947_s6, %s1122_s1  ;;  %p638_p4 = scmp.lt.u32.totalorder %s636_s30, %s631_s10 }
  0x37   : > { %p634_p12 = pnand %p632_p11, %p603_p3  ;;  %p640_p8 = scmp.lt.u32.totalorder %s631_s10, %s947_s6 }
  0x38   : > { %p639_p5 = por %p638_p4, %p637_p2 }
  0x39   : > { %p635_p10 = pneg %p634_p12 }
  0x3a   : > { %p641_p9 = por %p640_p8, %p639_p5 }
  0x3c   : > { %p642_p0 = pnand %p641_p9, %p635_p10 }
  0x3e   : > { %645 = shalt.err (!%p642_p0)
}
  0x3f   : > { %s646_s29 = scalar_lea.vmem %s207_s9, 128  ;;  %s794_s5 = smov [#allocation5]  }
  0x40   : > { %p647_p1 = scmp.ne.s32.totalorder %s207_s9, %s646_s29  ;;  %s651_s25 = sshll.u32 %s794_s5, 4  ;;  %s652_s25 = int_to_ptr.vmem [resolvable:$false] %s651_s25 }
  0x41   : > { %s653_s7 = scalar_lea.vmem %s652_s25, 256  ;;  %p654_p6 = scmp.lt.s32.totalorder %s207_s9, %s652_s25 }
  0x42   : > { %p649_p11 = pnand %p647_p1, %p603_p3  ;;  %p655_p7 = scmp.lt.s32.totalorder %s653_s7, %s646_s29 }
  0x44   : > { %p650_p12 = pneg %p649_p11  ;;  %p656_p2 = por %p655_p7, %p654_p6 }
  0x46   : > { %p657_p4 = pnand %p656_p2, %p650_p12 }
  0x48   : > { %660 = shalt.err (!%p657_p4)
}
  0x49   : > { %553 = dma.hbm_to_vmem [thread:$0]  (!%p900_p13), %s947_s6, 128, %s207_s9, %s195_s8  }
  0x4a   : > { %p1136_p10 = scmp.ne.s32.totalorder %s1135_s13, 0 }
  0x4b   : > { %s974_s10 = sand.u32 (!%p1136_p10), 1, %s783_s16   ;;  %p1137_p6 = scmp.ne.s32.totalorder (!%p1136_p10), %s1129_s26, 0 }
  0x4c   : > { %215 = sbr.rel (%p1136_p10) target bundleno = 160 (0xa0), region = 28  ;;  %s977_s12 = sshll.u32 (!%p1136_p10), %s974_s10, 3 }
  0x4d   : > { %s218_s14 = scalar_lea.sflag (!%p1136_p10), [#allocation3], %s974_s10  ;;  %s221_s30 = scalar_lea.vmem (!%p1136_p10), [#allocation2], %s977_s12 }
  0x53   : > { %762 = dma.done.wait (%p1137_p6), %s218_s14, 128  }
  0x54   : > { %764 = vsyncadd (%p1137_p6), %s218_s14, 4294967168  ;;  %s227_s11 = scalar_lea.sflag [#allocation6], %s974_s10  ;;  %s230_s13 = scalar_lea.vmem [#allocation5], %s977_s12 }
  0x55   : > { %766 = dma.done.wait (%p1137_p6), %s227_s11, 128  }
  0x56   : > { %768 = vsyncadd (%p1137_p6), %s227_s11, 4294967168  ;;  %s262_s6 = scalar_lea.vmem [#allocation8], %s977_s12  ;;  %s302_s8 = sand.u32 1, %s845_s19   ;;  %v997_v0 = vld [vmem:[%s221_s30] sm:$0xff]  ;;  %v999_v1 = vld [vmem:[%s230_s13] sm:$0xff] }
  0x57   : > { %s336_s9 = sshll.u32 %s262_s6, 4  ;;  %s994_s22 = sshll.u32 %s845_s19, 7  ;;  %v282_v2 = vsub.f32 %v999_v1, %v997_v0  ;;  %v293_v3 = vmax.f32 %v997_v0, 0.0  ;;  %v295_v4 = vmax.f32 %v999_v1, 0.0  ;;  %s1001_s9 = int_to_ptr.vmem [resolvable:$true] %s336_s9 }
  0x58   : > { %s269_s23 = scalar_lea.vmem [#allocation10], %s977_s12  ;;  %s1010_s5 = scalar_lea.hbm %s1124_s3, %s994_s22 }
  0x59   : > { %s350_s29 = sshll.u32 %s269_s23, 4  ;;  %s1019_s14 = scalar_lea.hbm %s1125_s4, %s994_s22  ;;  %v283_v5 = vadd.f32 1e-06, %v282_v2  ;;  %294 = vst [vmem:[%s262_s6] sm:$0xff] %v293_v3  ;;  %296 = vst [vmem:[%s269_s23] sm:$0xff] %v295_v4  ;;  %s1013_s29 = int_to_ptr.vmem [resolvable:$true] %s350_s29 }
  0x5a   : > { %s1021_s30 = scalar_lea.sflag [#allocation9], %s302_s8  ;;  %s661_s11 = scalar_lea.vmem %s1001_s9, 128 }
  0x5b   : > { %p662_p13 = scmp.ne.s32.totalorder %s1001_s9, %s661_s11  ;;  %p1138_p3 = scmp.ne.s32.totalorder %s1130_s27, 0 }
  0x5c   : > { %s795_s13 = smov [#allocation8]  }
  0x5d   : > { %p663_p7 = pnand %p662_p13, %p1138_p3  ;;  %s665_s19 = sshll.u32 %s795_s13, 4  ;;  %s666_s19 = int_to_ptr.vmem [resolvable:$false] %s665_s19 }
  0x5e   : > { %s667_s26 = scalar_lea.vmem %s666_s19, 256  ;;  %p668_p8 = scmp.lt.s32.totalorder %s1001_s9, %s666_s19 }
  0x5f   : > { %p664_p5 = pneg %p663_p7  ;;  %p669_p9 = scmp.lt.s32.totalorder %s667_s26, %s661_s11 }
  0x61   : > { %p670_p0 = por %p669_p9, %p668_p8 }
  0x63   : > { %p671_p1 = pnand %p670_p0, %p664_p5 }
  0x65   : > { %674 = shalt.err (!%p671_p1)
}
  0x66   : > { %s675_s6 = scalar_lea.hbm %s1010_s5, 128  ;;  %s679_s25 = scalar_lea.hbm %s1124_s3, 256 }
  0x67   : > { %p676_p11 = scmp.ne.s32.totalorder %s1010_s5, %s675_s6  ;;  %p680_p4 = scmp.lt.u32.totalorder %s1010_s5, %s1124_s3 }
  0x68   : > { %p681_p10 = scmp.lt.u32.totalorder %s679_s25, %s675_s6  ;;  %p683_p13 = scmp.lt.u32.totalorder %s675_s6, %s1010_s5 }
  0x69   : > { %p677_p12 = pnand %p676_p11, %p1138_p3 }
  0x6a   : > { %p682_p6 = por %p681_p10, %p680_p4 }
  0x6b   : > { %p678_p2 = pneg %p677_p12 }
  0x6c   : > { %p684_p7 = por %p683_p13, %p682_p6 }
  0x6e   : > { %p685_p5 = pnand %p684_p7, %p678_p2 }
  0x70   : > { %688 = shalt.err (!%p685_p5)
}
  0x71   : > { %542 = dma.vmem_to_hbm [thread:$0]  (%p1138_p3), %s1001_s9, 128, %s1010_s5, %s1021_s30   ;;  %599 = vrcp.f32 %v283_v5 }
  0x72   : > { %s689_s11 = scalar_lea.vmem %s1013_s29, 128  ;;  %s796_s19 = smov [#allocation10]  }
  0x73   : > { %p690_p8 = scmp.ne.s32.totalorder %s1013_s29, %s689_s11  ;;  %s693_s26 = sshll.u32 %s796_s19, 4  ;;  %s694_s26 = int_to_ptr.vmem [resolvable:$false] %s693_s26 }
  0x74   : > { %s695_s6 = scalar_lea.vmem %s694_s26, 256  ;;  %p696_p1 = scmp.lt.s32.totalorder %s1013_s29, %s694_s26 }
  0x75   : > { %p691_p9 = pnand %p690_p8, %p1138_p3  ;;  %p697_p11 = scmp.lt.s32.totalorder %s695_s6, %s689_s11 }
  0x77   : > { %p692_p0 = pneg %p691_p9  ;;  %p698_p12 = por %p697_p11, %p696_p1 }
  0x79   : > { %p699_p2 = pnand %p698_p12, %p692_p0 }
  0x7b   : > { %702 = shalt.err (!%p699_p2)
}
  0x7c   : > { %s703_s9 = scalar_lea.hbm %s1019_s14, 128  ;;  %s707_s23 = scalar_lea.hbm %s1125_s4, 256 }
  0x7d   : > { %p704_p4 = scmp.ne.s32.totalorder %s1019_s14, %s703_s9  ;;  %p708_p13 = scmp.lt.u32.totalorder %s1019_s14, %s1125_s4 }
  0x7e   : > { %p709_p7 = scmp.lt.u32.totalorder %s707_s23, %s703_s9  ;;  %p711_p8 = scmp.lt.u32.totalorder %s703_s9, %s1019_s14 }
  0x7f   : > { %p705_p10 = pnand %p704_p4, %p1138_p3 }
  0x80   : > { %p710_p5 = por %p709_p7, %p708_p13 }
  0x81   : > { %p706_p6 = pneg %p705_p10 }
  0x82   : > { %p712_p9 = por %p711_p8, %p710_p5 }
  0x84   : > { %p713_p0 = pnand %p712_p9, %p706_p6 }
  0x86   : > { %716 = shalt.err (!%p713_p0)
}
  0x87   : > { %543 = dma.vmem_to_hbm [thread:$0]  (%p1138_p3), %s1013_s29, 128, %s1019_s14, %s1021_s30   ;;  %vm277_vm0 = vcmp.lt.f32.partialorder %v997_v0, 0.0  ;;  %vm278_vm1 = vcmp.gt.f32.partialorder %v999_v1, 0.0  ;;  %v797_v6 = vmov 0.0   ;;  %v600_v8 = vpop.eup %599 }
  0x88   : > { %vm279_vm2 = vmand %vm277_vm0, %vm278_vm1  ;;  %v285_v9 = vmul.f32 %v600_v8, %v999_v1  ;;  %s255_s13 = scalar_lea.vmem [#allocation7], %s977_s12  ;;  %v520_v12 = vsel %vm278_vm1, 1.0, %v797_v6  ;;  %s1077_s30 = scalar_lea.hbm %s1123_s2, %s994_s22 }
  0x89   : > { %v519_v7 = vsel %vm279_vm2, 1.0, %v797_v6  ;;  %s322_s11 = sshll.u32 %s255_s13, 4  ;;  %s298_s19 = scalar_lea.sflag [#allocation4], %s974_s10  ;;  %s1071_s11 = int_to_ptr.vmem [resolvable:$true] %s322_s11 }
  0x8a   : > { %v287_v10 = vsub.f32 1.0, %v519_v7  ;;  %v286_v11 = vmul.f32 %v519_v7, %v285_v9  ;;  %s717_s26 = scalar_lea.vmem %s1071_s11, 128  ;;  %s798_s12 = smov [#allocation7]  }
  0x8b   : > { %p718_p1 = scmp.ne.s32.totalorder %s1071_s11, %s717_s26  ;;  %s721_s6 = sshll.u32 %s798_s12, 4  ;;  %s722_s6 = int_to_ptr.vmem [resolvable:$false] %s721_s6 }
  0x8c   : > { %v288_v13 = vadd.f32 %v287_v10, %v286_v11  ;;  %s723_s9 = scalar_lea.vmem %s722_s6, 256  ;;  %p724_p2 = scmp.lt.s32.totalorder %s1071_s11, %s722_s6 }
  0x8d   : > { %p719_p11 = pnand %p718_p1, %p1138_p3  ;;  %p725_p4 = scmp.lt.s32.totalorder %s723_s9, %s717_s26 }
  0x8e   : > { %v291_v14 = vmul.f32 %v520_v12, %v288_v13 }
  0x8f   : > { %p720_p12 = pneg %p719_p11  ;;  %p726_p10 = por %p725_p4, %p724_p2 }
  0x90   : > { %292 = vst [vmem:[%s255_s13] sm:$0xff] %v291_v14 }
  0x91   : > { %p727_p6 = pnand %p726_p10, %p720_p12 }
  0x93   : > { %730 = shalt.err (!%p727_p6)
}
  0x94   : > { %s731_s10 = scalar_lea.hbm %s1077_s30, 128  ;;  %s735_s8 = scalar_lea.hbm %s1123_s2, 256 }
  0x95   : > { %p732_p13 = scmp.ne.s32.totalorder %s1077_s30, %s731_s10  ;;  %p736_p8 = scmp.lt.u32.totalorder %s1077_s30, %s1123_s2 }
  0x96   : > { %p737_p9 = scmp.lt.u32.totalorder %s735_s8, %s731_s10  ;;  %p739_p1 = scmp.lt.u32.totalorder %s731_s10, %s1077_s30 }
  0x97   : > { %p733_p7 = pnand %p732_p13, %p1138_p3 }
  0x98   : > { %p738_p0 = por %p737_p9, %p736_p8 }
  0x99   : > { %p734_p5 = pneg %p733_p7 }
  0x9a   : > { %p740_p11 = por %p739_p1, %p738_p0 }
  0x9c   : > { %p741_p12 = pnand %p740_p11, %p734_p5 }
  0x9e   : > { %744 = shalt.err (!%p741_p12)
}
  0x9f   : > { %541 = dma.vmem_to_hbm [thread:$0]  (%p1138_p3), %s1071_s11, 128, %s1077_s30, %s298_s19  }
  0xa0 PF: > { %s362_s7 = sand.u32 1, %s779_s15   ;;  %p1139_p2 = scmp.ne.s32.totalorder %s1131_s28, 0 }
  0xa1   : > { %p1140_p4 = scmp.ge.s32.totalorder %s791_s18, 2  ;;  %s363_s13 = scalar_lea.sflag [#allocation4], %s362_s7 }
  0xa3   : > { %p555_p10 = pnand %p1140_p4, %p1139_p2 }
  0xa5   : > { %770 = dma.done.wait (!%p555_p10), %s363_s13, 128  }
  0xa6   : > { %772 = vsyncadd (!%p555_p10), %s363_s13, 4294967168  ;;  %s371_s29 = sand.u32 1, %s504_s20  }
  0xa7   : > { %s372_s14 = scalar_lea.sflag [#allocation9], %s371_s29 }
  0xa8   : > { %774 = dma.done.wait (!%p555_p10), %s372_s14, 256  }
  0xa9   : > { %776 = vsyncadd (!%p555_p10), %s372_s14, 4294967040  ;;  %p24_p3 = scmp.ge.s32.totalorder %s849_s21, 4   ;;  %s1141_s15 = smov %s783_s16 }
  0xaa   : > { %s1142_s16 = smov %s787_s17  ;;  %s1143_s17 = smov %s861_s24 }
  0xab   : > { %s1144_s18 = smov %s849_s21  ;;  %26 = sbr.rel (!%p24_p3) target bundleno = 9 (0x9), region = 118 }
  0xb2   :  { %386 = vsyncpa [#allocation3], 1 }
  0xb3   :  { %388 = vsyncpa [#allocation3 + $0x1], 1 }
  0xb4   :  { %389 = vsyncpa [#allocation6], 1 }
  0xb5   :  { %391 = vsyncpa [#allocation6 + $0x1], 1 }
  0xb6   :  { %392 = vsyncpa [#allocation4], 1 }
  0xb7   :  { %394 = vsyncpa [#allocation4 + $0x1], 1 }
  0xb8   :  { %395 = vsyncpa [#allocation9], 1 }
  0xb9   :  { %397 = vsyncpa [#allocation9 + $0x1], 1 }

</bundles_post_ra>
